<compile_context>
chip_gen: v5e
topology: v5e:2x2
jax: 0.10.0
libtpu: 0.0.40
codegen_flags: <defaults>
</compile_context>

<pallas_src>
import jax
import jax.numpy as jnp
from jax.experimental import pallas as pl
from jax.experimental.pallas import tpu as pltpu


def _pooling_kernel(x_ref, o_ref, acc_ref):
    # x_ref: (B, tc, tn) input tile, o_ref: (B, tc) output tile (resident over k),
    # acc_ref: (B, tc, tn) VMEM running-max accumulator (persists over k).
    k = pl.program_id(1)
    n_k = pl.num_programs(1)

    @pl.when(k == 0)
    def _init():
        if jnp.issubdtype(acc_ref.dtype, jnp.floating):
            neg = jnp.array(-jnp.inf, acc_ref.dtype)
        else:
            neg = jnp.array(jnp.iinfo(acc_ref.dtype).min, acc_ref.dtype)
        acc_ref[...] = jnp.full(acc_ref.shape, neg, acc_ref.dtype)

    # Element-wise running max (VPU only) -- hides under the input DMA.
    acc_ref[...] = jnp.maximum(acc_ref[...], x_ref[...].astype(acc_ref.dtype))

    @pl.when(k == n_k - 1)
    def _finalize():
        # Single cross-lane reduce + single store of the (B, tc) output.
        o_ref[...] = jnp.max(acc_ref[...], axis=-1).astype(o_ref.dtype)


def pooling(x: jax.Array, *, tn: int | None = None, tc: int | None = None,
            target_block_bytes: int = 2 * 1024 * 1024) -> jax.Array:
    """Max over axis 2 of a (B, C, N) array, computed in a Pallas TPU kernel."""
    B, C, N = x.shape
    itemsize = jnp.dtype(x.dtype).itemsize

    # --- channel tiling (parallel grid axis; lane-dense output when tiled) ---
    if tc is None:
        if C % 256 == 0 and C > 256:
            tc = 256
        elif C % 128 == 0 and C > 128:
            tc = 128
        else:
            tc = C  # single channel block; block dim == full dim is always legal
    assert C % tc == 0, "C must be divisible by the channel tile tc"

    # --- reduction (lane) tiling: multiple of 128, ~target_block_bytes per tile ---
    n_pad128 = pl.cdiv(N, 128) * 128
    if tn is None:
        tn = max(128, (target_block_bytes // max(1, B * tc * itemsize)) // 128 * 128)
        tn = min(tn, n_pad128)

    # Pad N up to a multiple of tn with the dtype's minimum (identity for max).
    n_padded = pl.cdiv(N, tn) * tn
    if jnp.issubdtype(x.dtype, jnp.floating):
        pad_val = -jnp.inf
        acc_dtype = jnp.float32
    else:
        pad_val = jnp.iinfo(x.dtype).min
        acc_dtype = jnp.int32
    if n_padded != N:
        x = jnp.pad(x, ((0, 0), (0, 0), (0, n_padded - N)), constant_values=pad_val)

    grid = (C // tc, n_padded // tn)

    # --- VMEM budget: 2x double-buffered input tiles + scratch accumulator ---
    in_block = B * tc * tn * itemsize
    acc_block = B * tc * tn * jnp.dtype(acc_dtype).itemsize
    out_block = B * tc * itemsize
    vmem_needed = 2 * in_block + acc_block + 2 * out_block
    vmem_limit = int(min(64 * 1024 * 1024,
                         max(32 * 1024 * 1024, int(vmem_needed * 1.25) + (2 << 20))))

    cost = pl.CostEstimate(
        flops=B * C * n_padded,                       # one compare per element
        transcendentals=0,
        bytes_accessed=B * C * n_padded * itemsize + B * C * itemsize,
    )

    return pl.pallas_call(
        _pooling_kernel,
        out_shape=jax.ShapeDtypeStruct((B, C), x.dtype),
        grid_spec=pltpu.PrefetchScalarGridSpec(
            num_scalar_prefetch=0,
            grid=grid,
            in_specs=[pl.BlockSpec((B, tc, tn), lambda c, k: (0, c, k))],
            out_specs=pl.BlockSpec((B, tc), lambda c, k: (0, c)),
            scratch_shapes=[pltpu.VMEM((B, tc, tn), acc_dtype)],
        ),
        compiler_params=pltpu.CompilerParams(
            dimension_semantics=("parallel", "arbitrary"),
            vmem_limit_bytes=vmem_limit,
        ),
        cost_estimate=cost,
    )(x)


if __name__ == "__main__":
    key = jax.random.PRNGKey(0)

    # Primary small test: (B, C, N) point-cloud features.
    B, C, N = 2, 8, 256
    x = jax.random.normal(key, (B, C, N), dtype=jnp.float32)
    out = jax.block_until_ready(pooling(x))
    ref = jnp.max(x, axis=2)
    assert out.shape == ref.shape == (B, C)
    assert jnp.allclose(out, ref), "Pallas pooling mismatch vs reference (test 1)"

    # Tail-handling test: N not a multiple of 128.
    k2 = jax.random.PRNGKey(1)
    x2 = jax.random.normal(k2, (2, 8, 250), dtype=jnp.float32)
    out2 = jax.block_until_ready(pooling(x2))
    assert jnp.allclose(out2, jnp.max(x2, axis=2)), "mismatch (test 2, ragged N)"

    # Channel-tiling test: C tiled into lane-dense 128-wide output blocks.
    k3 = jax.random.PRNGKey(2)
    x3 = jax.random.normal(k3, (2, 256, 384), dtype=jnp.bfloat16)
    out3 = jax.block_until_ready(pooling(x3))
    assert jnp.allclose(out3.astype(jnp.float32),
                        jnp.max(x3, axis=2).astype(jnp.float32)), "mismatch (test 3)"

    print("KERNEL_OK")
</pallas_src>

<mosaic_0001>
module attributes {stable_mosaic.version = 11 : i64} {
  func.func @_pooling_kernel(%arg0: i32, %arg1: i32, %arg2: memref<2x8x256xf32, #tpu.memory_space<vmem>>, %arg3: memref<2x8xf32, #tpu.memory_space<vmem>>, %arg4: memref<2x8x256xf32, #tpu.memory_space<vmem>>) attributes {dimension_semantics = [#tpu.dimension_semantics<parallel>, #tpu.dimension_semantics<arbitrary>], iteration_bounds = array<i64: 1, 1>, scalar_prefetch = 0 : i64, scratch_operands = 1 : i64, tpu.core_type = #tpu.core_type<tc>, window_params = [{transform_indices = @transform_0, window_bounds = array<i64: 2, 8, 256>}, {transform_indices = @transform_1, window_bounds = array<i64: 2, 8>}]} {
    %c0_i32 = arith.constant 0 : i32
    %0 = arith.cmpi eq, %arg1, %c0_i32 : i32
    %1 = arith.extui %0 : i1 to i32
    %c0_i32_0 = arith.constant 0 : i32
    %2 = arith.cmpi ne, %1, %c0_i32_0 : i32
    scf.if %2 {
      %cst = arith.constant 0xFF800000 : f32
      %10 = vector.broadcast %cst : f32 to vector<2x8x256xf32>
      %c0_11 = arith.constant 0 : index
      %c0_12 = arith.constant 0 : index
      %c0_13 = arith.constant 0 : index
      %11 = vector.load %arg4[%c0_11, %c0_12, %c0_13] : memref<2x8x256xf32, #tpu.memory_space<vmem>>, vector<2x8x256xf32>
      tpu.vector_store %arg4[%c0_11, %c0_12, %c0_13], %10 {strides = array<i32>} : memref<2x8x256xf32, #tpu.memory_space<vmem>>, vector<2x8x256xf32>,
    } else {
    }
    %c0 = arith.constant 0 : index
    %c0_1 = arith.constant 0 : index
    %c0_2 = arith.constant 0 : index
    %3 = vector.load %arg4[%c0, %c0_1, %c0_2] : memref<2x8x256xf32, #tpu.memory_space<vmem>>, vector<2x8x256xf32>
    %c0_3 = arith.constant 0 : index
    %c0_4 = arith.constant 0 : index
    %c0_5 = arith.constant 0 : index
    %4 = vector.load %arg2[%c0_3, %c0_4, %c0_5] : memref<2x8x256xf32, #tpu.memory_space<vmem>>, vector<2x8x256xf32>
    %5 = arith.maximumf %3, %4 : vector<2x8x256xf32>
    %c0_6 = arith.constant 0 : index
    %c0_7 = arith.constant 0 : index
    %c0_8 = arith.constant 0 : index
    %6 = vector.load %arg4[%c0_6, %c0_7, %c0_8] : memref<2x8x256xf32, #tpu.memory_space<vmem>>, vector<2x8x256xf32>
    tpu.vector_store %arg4[%c0_6, %c0_7, %c0_8], %5 {strides = array<i32>} : memref<2x8x256xf32, #tpu.memory_space<vmem>>, vector<2x8x256xf32>,
    %c0_i32_9 = arith.constant 0 : i32
    %7 = arith.cmpi eq, %arg1, %c0_i32_9 : i32
    %8 = arith.extui %7 : i1 to i32
    %c0_i32_10 = arith.constant 0 : i32
    %9 = arith.cmpi ne, %8, %c0_i32_10 : i32
    scf.if %9 {
      %c0_11 = arith.constant 0 : index
      %c0_12 = arith.constant 0 : index
      %c0_13 = arith.constant 0 : index
      %10 = vector.load %arg4[%c0_11, %c0_12, %c0_13] : memref<2x8x256xf32, #tpu.memory_space<vmem>>, vector<2x8x256xf32>
      %cst = arith.constant dense<0xFF800000> : vector<2x8xf32>
      %11 = vector.multi_reduction <maximumf>, %10, %cst [2] : vector<2x8x256xf32> to vector<2x8xf32>
      %c0_14 = arith.constant 0 : index
      %c0_15 = arith.constant 0 : index
      %12 = vector.load %arg3[%c0_14, %c0_15] : memref<2x8xf32, #tpu.memory_space<vmem>>, vector<2x8xf32>
      tpu.vector_store %arg3[%c0_14, %c0_15], %11 {strides = array<i32>} : memref<2x8xf32, #tpu.memory_space<vmem>>, vector<2x8xf32>,
    } else {
    }
    return
  }
  func.func @transform_0(%arg0: i32, %arg1: i32) -> (i32, i32, i32) {
    %c0_i32 = arith.constant 0 : i32
    %c0_i32_0 = arith.constant 0 : i32
    return %c0_i32, %arg0, %arg1 : i32, i32, i32
  }
  func.func @transform_1(%arg0: i32, %arg1: i32) -> (i32, i32) {
    %c0_i32 = arith.constant 0 : i32
    %c0_i32_0 = arith.constant 0 : i32
    return %c0_i32, %arg0 : i32, i32
  }
}

</mosaic_0001>

<bundles_post_ra>
// kernel: tpu_custom_call.1
= control target key start
LH: loop header
LB: loop body
LE: loop exit
PB: predicated region body
PF: predicated region fallthrough
CT: control target
= control target key end

     0   :  { %6 = vsyncpa [#allocation4], 0  ;;  %s166_s0 = inlined_call_operand.hbm [shape: f32[2,8,256], index: 0, kind: input, shape index: {}]   ;;  %s167_s1 = inlined_call_operand.hbm [shape: f32[2,8], index: 1, kind: output, shape index: {}]  }
   0x1   :  { %7 = vsyncpa [#allocation5], 0  ;;  %s12_s8 = sshll.u32 %s166_s0, 4  ;;  %s146_s9 = smov [#allocation3]   ;;  %s13_s8 = int_to_ptr.hbm [resolvable:$true] %s12_s8 }
   0x2   :  { %s14_s10 = sshll.u32 %s146_s9, 4  ;;  %s147_s11 = smov 256   ;;  %s15_s10 = int_to_ptr.vmem [resolvable:$true] %s14_s10 }
   0x3   :  { %s148_s12 = smov 16  }
   0x4   :  { %20 = dma.hbm_to_vmem [thread:$0]  %s13_s8, 512, %s15_s10, [#allocation4], %s147_s11, %s147_s11, %s148_s12  }
   0x5   :  { %142 = dma.done.wait [#allocation4], 512  }
   0x6   :  { %143 = vsyncadd [#allocation4], 4294966784  ;;  %v37_v0 = vld [vmem:[#allocation3] sm:$0xff]  ;;  %v38_v1 = vld [vmem:[#allocation3 + $0x8] sm:$0xff]  ;;  %v64_v7 = vlaneseq  ;;  %s149_s0 = smov [#allocation6]   ;;  %s80_s16 = sshll.u32 %s167_s1, 4  ;;  %s81_s16 = int_to_ptr.hbm [resolvable:$true] %s80_s16 }
   0x7   :  { %v56_v2 = vmax.f32 %v37_v0, %v38_v1  ;;  %v39_v3 = vld [vmem:[#allocation3 + $0x10] sm:$0xff]  ;;  %v40_v4 = vld [vmem:[#allocation3 + $0x18] sm:$0xff]  ;;  %s78_s13 = sshll.u32 %s149_s0, 4  ;;  %vm68_vm0 = vcmask 1041409   ;;  %vm71_vm1 = vcmask 58368   ;;  %s79_s13 = int_to_ptr.vmem [resolvable:$true] %s78_s13 }
   0x8   :  { %v59_v5 = vmax.f32 %v39_v3, %v40_v4  ;;  %v65_v8 = vand.u32 127, %v64_v7 }
   0x9   :  { %57 = vmax.xlane.f32.xlu0 %v56_v2 }
  0x11   :  { %60 = vmax.xlane.f32.xlu0 %v59_v5 }
  0x7c   :  { %v58_v6 = vpop.xlane.xlu0 %57 }
  0x7d   :  { %v66_v10 = vperm.slane %v58_v6, %v65_v8 }
  0x84   :  { %v61_v9 = vpop.xlane.xlu0 %60 }
  0x85   :  { %v67_v11 = vperm.slane %v61_v9, %v65_v8 }
  0x87   :  { %v69_v12 = vsel %vm68_vm0, %v67_v11, %v66_v10 }
  0x88   :  { %72 = vst.msk [vmem:[#allocation6] sm:$0x3] %vm71_vm1, %v69_v12 }
  0x89   :  { %83 = dma.vmem_to_hbm [thread:$0]  %s79_s13, 32, %s81_s16, [#allocation5]  }
  0x8a   :  { %144 = dma.done.wait [#allocation5], 32  }
  0x8b   :  { %145 = vsyncadd [#allocation5], 4294967264 }
  0x8c   :  { %88 = vsyncpa [#allocation4], 1 }
  0x8d   :  { %89 = vsyncpa [#allocation5], 1 }

</bundles_post_ra>
